<compile_context>
chip_gen: v6e
topology: v6e:2x2x1
jax: 0.10.0
libtpu: 0.0.40
codegen_flags: <defaults>
</compile_context>

<pallas_src>
import jax
import jax.numpy as jnp
import numpy as np
from jax.experimental import pallas as pl
from jax.experimental.pallas import tpu as pltpu


def _round_up(v, m):
    return ((v + m - 1) // m) * m


def _cdiv(a, b):
    return (a + b - 1) // b


def _steer_kernel(x_ref, wt_ref, o_ref):
    # out_tile = x_tile @ W^T_tile ; W^T is pre-transposed in the wrapper, so
    # this is a single MXU op with no cross-lane shuffle on the critical path.
    o_ref[...] = jnp.dot(
        x_ref[...], wt_ref[...], preferred_element_type=jnp.float32
    ).astype(o_ref.dtype)


def continuous_steerer_forward(x, angle_radians, generator):
    """out = x @ expm(angle_radians * G).T ; same shape/dtype as x.

    x: (..., D), generator: (D, D), angle_radians: scalar.
    """
    d = generator.shape[0]
    assert generator.shape == (d, d)
    orig_shape = x.shape
    dtype = x.dtype
    itemsize = jnp.dtype(dtype).itemsize
    sub = {4: 8, 2: 16, 1: 32}.get(itemsize, 8)  # sublane multiple per dtype

    xf = x.reshape(-1, d)
    n = xf.shape[0]

    # One-time work outside the kernel: W^T = expm(angle*G).T == expm(angle*G.T).
    angle = jnp.asarray(angle_radians, jnp.float32)
    wt = jax.scipy.linalg.expm(angle * generator.astype(jnp.float32).T)

    # ---- lane-dense packing for small D -------------------------------------
    # Pack g rows per kernel row so the last dim is 128 (unmasked stores,
    # full MXU fill).  The weight becomes block-diag(W^T, ..., W^T).
    g = 128 // d if (d < 128 and 128 % d == 0) else 1
    if g > 1:
        wt = jnp.kron(jnp.eye(g, dtype=wt.dtype), wt)  # (g*d, g*d)
        rem = (-n) % g
        if rem:  # pad at most g-1 rows (tiny; not a full-tile pad)
            xf = jnp.concatenate([xf, jnp.zeros((rem, d), dtype)], axis=0)
        n_eff = (n + rem) // g
        d_eff = g * d
        xf = xf.reshape(n_eff, d_eff)
    else:
        # For 128 <= D (or D not dividing 128) the last dim equals the full
        # array dim -> legal block; D >= 128 is lane-dense already.
        n_eff, d_eff = n, d
    wt = wt.astype(dtype)

    # ---- generation-aware VMEM budget ---------------------------------------
    try:
        vmem_cap = int(pltpu.get_tpu_info().vmem_capacity_bytes)
    except Exception:
        vmem_cap = 64 << 20  # conservative (v7x per-TC VMEM)
    budget = int(0.75 * vmem_cap)

    # ---- weight column tiling (only when the full weight is too big) --------
    w_budget = min(16 << 20, budget // 3)
    tnc = d_eff
    if 2 * d_eff * d_eff * itemsize > w_budget:
        tnc = max(128, (w_budget // (2 * d_eff * itemsize)) // 128 * 128)
        tnc = min(tnc, d_eff)

    # ---- row tile: sized by bytes (~4 MiB x-tile), dtype-aware sublanes -----
    bytes_target = 4 << 20
    tn = max(sub, (bytes_target // (d_eff * itemsize)) // sub * sub)
    # keep >= ~8 grid steps (v7x megacore balance) while tiles stay >= 512 KiB
    min_tn = max(sub, ((512 << 10) // (d_eff * itemsize)) // sub * sub)
    tn = min(tn, max(min_tn, _round_up(_cdiv(n_eff, 8), sub)))
    # fit double-buffered (x, out) tiles plus the weight tiles into the budget
    per_row_bytes = 2 * (d_eff + tnc) * itemsize
    avail = max(budget - 2 * d_eff * tnc * itemsize - (2 << 20),
                per_row_bytes * sub)
    tn = min(tn, max(sub, (avail // per_row_bytes) // sub * sub))
    tn = max(sub, min(tn, _round_up(n_eff, sub)))

    vmem_limit = (2 * tn * (d_eff + tnc) + 2 * d_eff * tnc) * itemsize + (2 << 20)
    vmem_limit = int(min(max(vmem_limit, 16 << 20), budget))

    grid = (_cdiv(n_eff, tn), _cdiv(d_eff, tnc))

    out = pl.pallas_call(
        _steer_kernel,
        out_shape=jax.ShapeDtypeStruct((n_eff, d_eff), dtype),
        grid_spec=pltpu.PrefetchScalarGridSpec(
            num_scalar_prefetch=0,
            grid=grid,
            in_specs=[
                pl.BlockSpec((tn, d_eff), lambda i, j: (i, 0)),   # x row tile
                pl.BlockSpec((d_eff, tnc), lambda i, j: (0, j)),  # W^T col tile
            ],
            out_specs=pl.BlockSpec((tn, tnc), lambda i, j: (i, j)),
        ),
        compiler_params=pltpu.CompilerParams(
            dimension_semantics=("parallel", "parallel"),
            vmem_limit_bytes=vmem_limit,
        ),
        cost_estimate=pl.CostEstimate(
            flops=2 * n_eff * d_eff * d_eff,
            transcendentals=0,
            bytes_accessed=(2 * n_eff * d_eff + d_eff * d_eff) * itemsize,
        ),
    )(xf, wt)

    if g > 1:
        out = out.reshape(n_eff * g, d)
        if n_eff * g != n:
            out = out[:n]
    return out.reshape(orig_shape)


def steer_descriptions(descriptions, angle_radians, generator, normalize=False):
    """Equivalent of ContinuousSteerer.steer_descriptions."""
    out = continuous_steerer_forward(descriptions, angle_radians, generator)
    if normalize:
        out = out / jnp.maximum(
            jnp.linalg.norm(out, axis=-1, keepdims=True), 1e-12
        )
    return out


if __name__ == "__main__":
    key = jax.random.PRNGKey(0)
    k_gen1, k_gen2, k_x1, k_x2, k_x3 = jax.random.split(key, 5)
    angle = 0.7  # radians

    # Case A: small descriptor dim (D=32 < 128) -> lane-dense packed path.
    D1 = 32
    gen1 = 0.1 * jax.random.normal(k_gen1, (D1, D1), dtype=jnp.float32)
    x1 = jax.random.normal(k_x1, (2, 64, D1), dtype=jnp.float32)   # even rows
    x2 = jax.random.normal(k_x2, (3, 37, D1), dtype=jnp.float32)   # ragged rows
    out1 = jax.block_until_ready(continuous_steerer_forward(x1, angle, gen1))
    out2 = jax.block_until_ready(steer_descriptions(x2, angle, gen1, normalize=True))

    # Case B: lane-width descriptor dim (D=128) -> direct (unpacked) path.
    D2 = 128
    gen2 = 0.05 * jax.random.normal(k_gen2, (D2, D2), dtype=jnp.float32)
    x3 = jax.random.normal(k_x3, (2, 8, D2), dtype=jnp.float32)
    out3 = jax.block_until_ready(continuous_steerer_forward(x3, angle, gen2))

    # References: F.linear(x, expm(angle*G)) == x @ expm(angle*G).T
    w1 = jax.scipy.linalg.expm(jnp.float32(angle) * gen1)
    w2 = jax.scipy.linalg.expm(jnp.float32(angle) * gen2)
    ref1 = jnp.einsum("...d,ed->...e", x1, w1)
    ref2 = jnp.einsum("...d,ed->...e", x2, w1)
    ref2 = ref2 / jnp.maximum(jnp.linalg.norm(ref2, axis=-1, keepdims=True), 1e-12)
    ref3 = jnp.einsum("...d,ed->...e", x3, w2)

    assert out1.shape == x1.shape and out1.dtype == x1.dtype
    assert out2.shape == x2.shape and out2.dtype == x2.dtype
    assert out3.shape == x3.shape and out3.dtype == x3.dtype
    np.testing.assert_allclose(np.asarray(out1), np.asarray(ref1), rtol=5e-4, atol=5e-4)
    np.testing.assert_allclose(np.asarray(out2), np.asarray(ref2), rtol=5e-4, atol=5e-4)
    np.testing.assert_allclose(np.asarray(out3), np.asarray(ref3), rtol=5e-4, atol=5e-4)
    print("KERNEL_OK")
</pallas_src>

<mosaic_0001>
module attributes {stable_mosaic.version = 11 : i64} {
  func.func @_steer_kernel(%arg0: i32, %arg1: i32, %arg2: memref<32x128xf32, #tpu.memory_space<vmem>>, %arg3: memref<128x128xf32, #tpu.memory_space<vmem>>, %arg4: memref<32x128xf32, #tpu.memory_space<vmem>>) attributes {dimension_semantics = [#tpu.dimension_semantics<parallel>, #tpu.dimension_semantics<parallel>], iteration_bounds = array<i64: 1, 1>, scalar_prefetch = 0 : i64, scratch_operands = 0 : i64, tpu.core_type = #tpu.core_type<tc>, window_params = [{transform_indices = @transform_0, window_bounds = array<i64: 32, 128>}, {transform_indices = @transform_1, window_bounds = array<i64: 128, 128>}, {transform_indices = @transform_2, window_bounds = array<i64: 32, 128>}]} {
    %c0 = arith.constant 0 : index
    %c0_0 = arith.constant 0 : index
    %0 = vector.load %arg2[%c0, %c0_0] : memref<32x128xf32, #tpu.memory_space<vmem>>, vector<32x128xf32>
    %c0_1 = arith.constant 0 : index
    %c0_2 = arith.constant 0 : index
    %1 = vector.load %arg3[%c0_1, %c0_2] : memref<128x128xf32, #tpu.memory_space<vmem>>, vector<128x128xf32>
    %cst = arith.constant dense<0.000000e+00> : vector<32x128xf32>
    %2 = tpu.matmul %0, %1, %cst {dimension_numbers = #tpu.dot_dimension_numbers<[1], [0], [0], [1], [0, 0, 1, 1], [], []>} : vector<32x128xf32>, vector<128x128xf32>, vector<32x128xf32> -> vector<32x128xf32>
    %c0_3 = arith.constant 0 : index
    %c0_4 = arith.constant 0 : index
    %3 = vector.load %arg4[%c0_3, %c0_4] : memref<32x128xf32, #tpu.memory_space<vmem>>, vector<32x128xf32>
    tpu.vector_store %arg4[%c0_3, %c0_4], %2 {strides = array<i32>} : memref<32x128xf32, #tpu.memory_space<vmem>>, vector<32x128xf32>,
    return
  }
  func.func @transform_0(%arg0: i32, %arg1: i32) -> (i32, i32) {
    %c0_i32 = arith.constant 0 : i32
    %c0_i32_0 = arith.constant 0 : i32
    return %arg0, %c0_i32 : i32, i32
  }
  func.func @transform_1(%arg0: i32, %arg1: i32) -> (i32, i32) {
    %c0_i32 = arith.constant 0 : i32
    %c0_i32_0 = arith.constant 0 : i32
    return %c0_i32, %arg1 : i32, i32
  }
  func.func @transform_2(%arg0: i32, %arg1: i32) -> (i32, i32) {
    %c0_i32 = arith.constant 0 : i32
    return %arg0, %arg1 : i32, i32
  }
}

</mosaic_0001>

<bundles_post_ra>
// kernel: tpu_custom_call.1
= control target key start
LH: loop header
LB: loop body
LE: loop exit
PB: predicated region body
PF: predicated region fallthrough
CT: control target
= control target key end

     0   :  { %7 = vsyncpa [#allocation3], 0  ;;  %s366_s0 = inlined_call_operand.hbm [shape: f32[32,128], index: 0, kind: input, shape index: {}]   ;;  %s367_s1 = inlined_call_operand.hbm [shape: f32[128,128], index: 1, kind: input, shape index: {}]   ;;  %s368_s2 = inlined_call_operand.hbm [shape: f32[32,128], index: 2, kind: output, shape index: {}]  }
   0x1   :  { %8 = vsyncpa [#allocation6], 0 }
   0x2   :  { %9 = vsyncpa [#allocation4], 0  ;;  %s328_s9 = smov [#allocation2]  }
   0x3   :  { %s15_s10 = sshll.u32 %s328_s9, 4  ;;  %s16_s10 = int_to_ptr.vmem [resolvable:$true] %s15_s10 }
   0x4   :  { %s270_s11 = scalar_lea.vmem %s16_s10, 512  ;;  %p275_p1 = scmp.lt.s32.totalorder %s16_s10, %s16_s10 }
   0x5   :  { %p271_p0 = scmp.ne.s32.totalorder %s16_s10, %s270_s11  ;;  %p276_p2 = scmp.lt.s32.totalorder %s270_s11, %s270_s11 }
   0x7   :  { %p277_p3 = por %p276_p2, %p275_p1 }
   0x9   :  { %p278_p4 = pnand %p277_p3, %p271_p0 }
   0xb   :  { %281 = shalt.err (!%p278_p4)
}
   0xc   :  { %s329_s12 = smov 128   ;;  %s330_s13 = smov 8  }
   0xd   :  { %21 = dma.hbm_to_vmem [thread:$0]  %s366_s0, 512, %s16_s10, [#allocation3], %s329_s12, %s329_s12, %s330_s13  }
   0xe   :  { %s331_s16 = smov [#allocation5]  }
   0xf   :  { %s27_s17 = sshll.u32 %s331_s16, 4  ;;  %s28_s17 = int_to_ptr.vmem [resolvable:$true] %s27_s17 }
  0x10   :  { %s290_s18 = scalar_lea.vmem %s28_s17, 2048  ;;  %p295_p6 = scmp.lt.s32.totalorder %s28_s17, %s28_s17 }
  0x11   :  { %p291_p5 = scmp.ne.s32.totalorder %s28_s17, %s290_s18  ;;  %p296_p7 = scmp.lt.s32.totalorder %s290_s18, %s290_s18 }
  0x13   :  { %p297_p8 = por %p296_p7, %p295_p6 }
  0x15   :  { %p298_p9 = pnand %p297_p8, %p291_p5 }
  0x17   :  { %301 = shalt.err (!%p298_p9)
}
  0x18   :  { %33 = dma.hbm_to_vmem [thread:$0]  %s367_s1, 2048, %s28_s17, [#allocation6], %s329_s12, %s329_s12, %s330_s13  }
  0x19   :  { %322 = dma.done.wait [#allocation3], 512  }
  0x1a   :  { %323 = vsyncadd [#allocation3], 4294966784 }
  0x1b   :  { %324 = dma.done.wait [#allocation6], 2048  }
  0x1c   :  { %325 = vsyncadd [#allocation6], 4294965248  ;;  %v59_v0 = vld [vmem:[#allocation5 + $0x78] sm:$0xff]  ;;  %v58_v1 = vld [vmem:[#allocation5 + $0x70] sm:$0xff]  ;;  %s332_s0 = smov [#allocation7]  }
  0x1d   :  { %187 = vmatprep.subr.mxu0 %v59_v0  ;;  %225 = vmatprep.subr.mxu1 %v59_v0  ;;  %v57_v2 = vld [vmem:[#allocation5 + $0x68] sm:$0xff]  ;;  %v56_v3 = vld [vmem:[#allocation5 + $0x60] sm:$0xff]  ;;  %v55_v4 = vld [vmem:[#allocation5 + $0x58] sm:$0xff]  ;;  %s154_s1 = sshll.u32 %s332_s0, 4  ;;  %s155_s1 = int_to_ptr.vmem [resolvable:$true] %s154_s1 }
  0x1e   :  { %188 = vmatpush3.msra.mxu0 %v59_v0  ;;  %241 = vmatpush3.msra.mxu1 %v59_v0  ;;  %v54_v5 = vld [vmem:[#allocation5 + $0x50] sm:$0xff]  ;;  %v53_v6 = vld [vmem:[#allocation5 + $0x48] sm:$0xff]  ;;  %v52_v7 = vld [vmem:[#allocation5 + $0x40] sm:$0xff]  ;;  %s302_s21 = scalar_lea.vmem %s155_s1, 512  ;;  %p307_p11 = scmp.lt.s32.totalorder %s155_s1, %s155_s1 }
  0x1f   :  { %189 = vmatprep.subr.mxu0 %v58_v1  ;;  %226 = vmatprep.subr.mxu1 %v58_v1  ;;  %v51_v8 = vld [vmem:[#allocation5 + $0x38] sm:$0xff]  ;;  %v50_v9 = vld [vmem:[#allocation5 + $0x30] sm:$0xff]  ;;  %v49_v10 = vld [vmem:[#allocation5 + $0x28] sm:$0xff]  ;;  %p303_p10 = scmp.ne.s32.totalorder %s155_s1, %s302_s21  ;;  %p308_p12 = scmp.lt.s32.totalorder %s302_s21, %s302_s21 }
  0x20   :  { %190 = vmatpush3.msra.mxu0 %v58_v1  ;;  %242 = vmatpush3.msra.mxu1 %v58_v1  ;;  %v48_v11 = vld [vmem:[#allocation5 + $0x20] sm:$0xff]  ;;  %v47_v12 = vld [vmem:[#allocation5 + $0x18] sm:$0xff]  ;;  %v46_v13 = vld [vmem:[#allocation5 + $0x10] sm:$0xff] }
  0x21   :  { %191 = vmatprep.subr.mxu0 %v57_v2  ;;  %227 = vmatprep.subr.mxu1 %v57_v2  ;;  %v45_v14 = vld [vmem:[#allocation5 + $0x8] sm:$0xff]  ;;  %v44_v15 = vld [vmem:[#allocation5] sm:$0xff]  ;;  %v42_v17 = vld [vmem:[#allocation2 + $0x10] sm:$0xff]  ;;  %p309_p13 = por %p308_p12, %p307_p11 }
  0x22   :  { %192 = vmatpush3.msra.mxu0 %v57_v2  ;;  %243 = vmatpush3.msra.mxu1 %v57_v2  ;;  %v40_v16 = vld [vmem:[#allocation2] sm:$0xff]  ;;  %v41_v18 = vld [vmem:[#allocation2 + $0x8] sm:$0xff]  ;;  %v43_v19 = vld [vmem:[#allocation2 + $0x18] sm:$0xff] }
  0x23   :  { %193 = vmatprep.subr.mxu0 %v56_v3  ;;  %228 = vmatprep.subr.mxu1 %v56_v3  ;;  %p310_p0 = pnand %p309_p13, %p303_p10 }
  0x24   :  { %194 = vmatpush3.msra.mxu0 %v56_v3  ;;  %244 = vmatpush3.msra.mxu1 %v56_v3 }
  0x25   :  { %195 = vmatprep.subr.mxu0 %v55_v4  ;;  %229 = vmatprep.subr.mxu1 %v55_v4 }
  0x26   :  { %196 = vmatpush3.msra.mxu0 %v55_v4  ;;  %245 = vmatpush3.msra.mxu1 %v55_v4 }
  0x27   :  { %197 = vmatprep.subr.mxu0 %v54_v5  ;;  %230 = vmatprep.subr.mxu1 %v54_v5 }
  0x28   :  { %198 = vmatpush3.msra.mxu0 %v54_v5  ;;  %246 = vmatpush3.msra.mxu1 %v54_v5 }
  0x29   :  { %199 = vmatprep.subr.mxu0 %v53_v6  ;;  %231 = vmatprep.subr.mxu1 %v53_v6 }
  0x2a   :  { %200 = vmatpush3.msra.mxu0 %v53_v6  ;;  %247 = vmatpush3.msra.mxu1 %v53_v6 }
  0x2b   :  { %201 = vmatprep.subr.mxu0 %v52_v7  ;;  %232 = vmatprep.subr.mxu1 %v52_v7 }
  0x2c   :  { %202 = vmatpush3.msra.mxu0 %v52_v7  ;;  %248 = vmatpush3.msra.mxu1 %v52_v7 }
  0x2d   :  { %203 = vmatprep.subr.mxu0 %v51_v8  ;;  %233 = vmatprep.subr.mxu1 %v51_v8 }
  0x2e   :  { %204 = vmatpush3.msra.mxu0 %v51_v8  ;;  %249 = vmatpush3.msra.mxu1 %v51_v8 }
  0x2f   :  { %205 = vmatprep.subr.mxu0 %v50_v9  ;;  %234 = vmatprep.subr.mxu1 %v50_v9 }
  0x30   :  { %206 = vmatpush3.msra.mxu0 %v50_v9  ;;  %250 = vmatpush3.msra.mxu1 %v50_v9 }
  0x31   :  { %207 = vmatprep.subr.mxu0 %v49_v10  ;;  %235 = vmatprep.subr.mxu1 %v49_v10 }
  0x32   :  { %208 = vmatpush3.msra.mxu0 %v49_v10  ;;  %251 = vmatpush3.msra.mxu1 %v49_v10 }
  0x33   :  { %209 = vmatprep.subr.mxu0 %v48_v11  ;;  %236 = vmatprep.subr.mxu1 %v48_v11 }
  0x34   :  { %210 = vmatpush3.msra.mxu0 %v48_v11  ;;  %252 = vmatpush3.msra.mxu1 %v48_v11 }
  0x35   :  { %211 = vmatprep.subr.mxu0 %v47_v12  ;;  %237 = vmatprep.subr.mxu1 %v47_v12 }
  0x36   :  { %212 = vmatpush3.msra.mxu0 %v47_v12  ;;  %253 = vmatpush3.msra.mxu1 %v47_v12 }
  0x37   :  { %213 = vmatprep.subr.mxu0 %v46_v13  ;;  %238 = vmatprep.subr.mxu1 %v46_v13 }
  0x38   :  { %214 = vmatpush3.msra.mxu0 %v46_v13  ;;  %254 = vmatpush3.msra.mxu1 %v46_v13 }
  0x39   :  { %215 = vmatprep.subr.mxu0 %v45_v14  ;;  %239 = vmatprep.subr.mxu1 %v45_v14 }
  0x3a   :  { %216 = vmatpush3.msra.mxu0 %v45_v14  ;;  %255 = vmatpush3.msra.mxu1 %v45_v14 }
  0x3b   :  { %217 = vmatprep.subr.mxu0 %v44_v15  ;;  %240 = vmatprep.subr.mxu1 %v44_v15 }
  0x3c   :  { %218 = vmatpush3.msra.mxu0 %v44_v15  ;;  %256 = vmatpush3.msra.mxu1 %v44_v15 }
  0x3d   :  { %219 = vmatprep.mubr.f32.mxu0 %v40_v16  ;;  %222 = vmatprep.mubr.f32.mxu1 %v42_v17 }
  0x3e   :  { %220 = vmatmul.mubr.f32.vlgmr.msra.gmra.mxu0 %v41_v18  ;;  %223 = vmatmul.mubr.f32.vlgmr.msra.gmra.mxu1 %v43_v19 }
  0xfe   :  { %v221_v20 = vpop.f32.mrf.mxu0  ;;  %v224_v21 = vpop.f32.mrf.mxu1 }
  0xff   :  { %146 = vst [vmem:[#allocation7 + $0x8] sm:$0xff] %v221_v20  ;;  %148 = vst [vmem:[#allocation7 + $0x18] sm:$0xff] %v224_v21 }
 0x100   :  { %v126_v22 = vpop.f32.mrf.mxu0  ;;  %v136_v23 = vpop.f32.mrf.mxu1 }
 0x101   :  { %145 = vst [vmem:[#allocation7] sm:$0xff] %v126_v22  ;;  %147 = vst [vmem:[#allocation7 + $0x10] sm:$0xff] %v136_v23 }
 0x102   :  { %313 = shalt.err (!%p310_p0)
}
 0x103   :  { %160 = dma.vmem_to_hbm [thread:$0]  %s155_s1, 512, %s368_s2, [#allocation4], %s329_s12, %s329_s12, %s330_s13  }
 0x104   :  { %326 = dma.done.wait [#allocation4], 512  }
 0x105   :  { %327 = vsyncadd [#allocation4], 4294966784 }
 0x106   :  { %164 = vsyncpa [#allocation3], 1 }
 0x107   :  { %165 = vsyncpa [#allocation6], 1 }
 0x108   :  { %166 = vsyncpa [#allocation4], 1 }

</bundles_post_ra>
